<compile_context>
chip_gen: v7x
topology: tpu7x:2x2x1
jax: 0.10.0
libtpu: 0.0.40
codegen_flags: <defaults>
</compile_context>

<pallas_src>
import jax
import jax.numpy as jnp
from jax.experimental import pallas as pl
from jax.experimental.pallas import tpu as pltpu


def _slice_cat_kernel(x1_ref, x2_ref, x3_ref, o_ref):
    # Refs hold b_tile batch elements:
    #   x*_ref: (bt, C, H, W)     o_ref: (bt, 3*C, H - size, W - size)
    c = x1_ref.shape[1]
    hs = o_ref.shape[2]
    ws = o_ref.shape[3]
    # Slice each input down to (hs, ws) and store it into its static channel
    # band of the output -- the channel concat is pure addressing, no gathers.
    o_ref[:, 0 * c:1 * c, :, :] = x1_ref[:, :, :hs, :ws]
    o_ref[:, 1 * c:2 * c, :, :] = x2_ref[:, :, :hs, :ws]
    o_ref[:, 2 * c:3 * c, :, :] = x3_ref[:, :, :hs, :ws]


def slice_cat(x1, x2, x3, *, size=1, padding=4, b_tile=None):
    b, c, h, w = x1.shape
    assert x2.shape == x1.shape and x3.shape == x1.shape
    assert padding >= 0
    # Validate the pad-then-slice cancellation against the module's actual
    # offsets: slice starts at `padding` (== left/top pad width) and spans
    # (h - size, w - size), so it stays inside the original image iff
    # 0 <= size <= h, w.  Outside that range the zero border would be read and
    # this kernel would diverge from the reference.
    assert 0 <= size <= h and size <= w
    hs, ws = h - size, w - size
    assert hs > 0 and ws > 0

    # ---- batch tiling: amortize per-grid-step overhead (~0.35 us/step). ----
    # Per-element double-buffered VMEM footprint, using padded (8,128) tiles.
    itemsize = jnp.dtype(x1.dtype).itemsize

    def _padded(rows, cols):
        return ((rows + 7) // 8 * 8) * ((cols + 127) // 128 * 128)

    per_elem_bytes = 2 * itemsize * (3 * c * _padded(h, w) + 3 * c * _padded(hs, ws))
    if b_tile is None:
        vmem_budget = 12 * 1024 * 1024  # safe under v5e's 16 MiB default scoped VMEM
        b_tile = max(1, min(b, vmem_budget // max(per_elem_bytes, 1)))
    b_tile = max(1, min(b_tile, b))
    grid = (pl.cdiv(b, b_tile),)

    out_shape = jax.ShapeDtypeStruct((b, 3 * c, hs, ws), x1.dtype)

    # Full-extent last dims sidestep the (8,128) block-divisibility rule and
    # keep every DMA a large rectangular strided copy.  For the reference
    # shape (b=2) the whole batch fits in one grid step; larger batches get
    # cdiv(b, b_tile) independent "parallel" steps (sharded across TCs on v7x).
    in_spec = pl.BlockSpec((b_tile, c, h, w), lambda n: (n, 0, 0, 0))
    out_spec = pl.BlockSpec((b_tile, 3 * c, hs, ws), lambda n: (n, 0, 0, 0))

    return pl.pallas_call(
        _slice_cat_kernel,
        out_shape=out_shape,
        grid=grid,
        in_specs=[in_spec, in_spec, in_spec],
        out_specs=out_spec,
        compiler_params=pltpu.CompilerParams(
            dimension_semantics=("parallel",),
        ),
    )(x1, x2, x3)


if __name__ == "__main__":
    key = jax.random.PRNGKey(0)
    k1, k2, k3 = jax.random.split(key, 3)
    shape = (2, 3, 64, 64)  # matches the PyTorch module's inputs
    x1 = jax.random.normal(k1, shape, dtype=jnp.float32)
    x2 = jax.random.normal(k2, shape, dtype=jnp.float32)
    x3 = jax.random.normal(k3, shape, dtype=jnp.float32)

    out = jax.block_until_ready(slice_cat(x1, x2, x3, size=1, padding=4))

    # Pure-JAX reference (pad-then-slice == plain corner slice for this config).
    size = 1
    ref = jnp.concatenate(
        [x[:, :, : shape[2] - size, : shape[3] - size] for x in (x1, x2, x3)],
        axis=1,
    )
    assert out.shape == ref.shape, (out.shape, ref.shape)
    # Exact copy op -> exact equality check (no tolerance to mask addressing bugs).
    assert bool(jnp.array_equal(out, ref)), "Pallas output mismatch vs JAX reference"
    print("KERNEL_OK")
</pallas_src>

<mosaic_0001>
module attributes {stable_mosaic.version = 11 : i64} {
  func.func @_slice_cat_kernel(%arg0: i32, %arg1: memref<2x3x64x64xf32, #tpu.memory_space<vmem>>, %arg2: memref<2x3x64x64xf32, #tpu.memory_space<vmem>>, %arg3: memref<2x3x64x64xf32, #tpu.memory_space<vmem>>, %arg4: memref<2x9x63x63xf32, #tpu.memory_space<vmem>>) attributes {dimension_semantics = [#tpu.dimension_semantics<parallel>], iteration_bounds = array<i64: 1>, scalar_prefetch = 0 : i64, scratch_operands = 0 : i64, tpu.core_type = #tpu.core_type<tc>, window_params = [{transform_indices = @transform_0, window_bounds = array<i64: 2, 3, 64, 64>}, {transform_indices = @transform_1, window_bounds = array<i64: 2, 3, 64, 64>}, {transform_indices = @transform_2, window_bounds = array<i64: 2, 3, 64, 64>}, {transform_indices = @transform_3, window_bounds = array<i64: 2, 9, 63, 63>}]} {
    %c0 = arith.constant 0 : index
    %c0_0 = arith.constant 0 : index
    %c0_1 = arith.constant 0 : index
    %c0_2 = arith.constant 0 : index
    %0 = vector.load %arg1[%c0, %c0_0, %c0_1, %c0_2] : memref<2x3x64x64xf32, #tpu.memory_space<vmem>>, vector<2x3x63x63xf32>
    %c0_3 = arith.constant 0 : index
    %c0_4 = arith.constant 0 : index
    %c0_5 = arith.constant 0 : index
    %c0_6 = arith.constant 0 : index
    %1 = vector.load %arg4[%c0_3, %c0_4, %c0_5, %c0_6] : memref<2x9x63x63xf32, #tpu.memory_space<vmem>>, vector<2x3x63x63xf32>
    tpu.vector_store %arg4[%c0_3, %c0_4, %c0_5, %c0_6], %0 {strides = array<i32>} : memref<2x9x63x63xf32, #tpu.memory_space<vmem>>, vector<2x3x63x63xf32>,
    %c0_7 = arith.constant 0 : index
    %c0_8 = arith.constant 0 : index
    %c0_9 = arith.constant 0 : index
    %c0_10 = arith.constant 0 : index
    %2 = vector.load %arg2[%c0_7, %c0_8, %c0_9, %c0_10] : memref<2x3x64x64xf32, #tpu.memory_space<vmem>>, vector<2x3x63x63xf32>
    %c0_11 = arith.constant 0 : index
    %c3 = arith.constant 3 : index
    %c0_12 = arith.constant 0 : index
    %c0_13 = arith.constant 0 : index
    %3 = vector.load %arg4[%c0_11, %c3, %c0_12, %c0_13] : memref<2x9x63x63xf32, #tpu.memory_space<vmem>>, vector<2x3x63x63xf32>
    tpu.vector_store %arg4[%c0_11, %c3, %c0_12, %c0_13], %2 {strides = array<i32>} : memref<2x9x63x63xf32, #tpu.memory_space<vmem>>, vector<2x3x63x63xf32>,
    %c0_14 = arith.constant 0 : index
    %c0_15 = arith.constant 0 : index
    %c0_16 = arith.constant 0 : index
    %c0_17 = arith.constant 0 : index
    %4 = vector.load %arg3[%c0_14, %c0_15, %c0_16, %c0_17] : memref<2x3x64x64xf32, #tpu.memory_space<vmem>>, vector<2x3x63x63xf32>
    %c0_18 = arith.constant 0 : index
    %c6 = arith.constant 6 : index
    %c0_19 = arith.constant 0 : index
    %c0_20 = arith.constant 0 : index
    %5 = vector.load %arg4[%c0_18, %c6, %c0_19, %c0_20] : memref<2x9x63x63xf32, #tpu.memory_space<vmem>>, vector<2x3x63x63xf32>
    tpu.vector_store %arg4[%c0_18, %c6, %c0_19, %c0_20], %4 {strides = array<i32>} : memref<2x9x63x63xf32, #tpu.memory_space<vmem>>, vector<2x3x63x63xf32>,
    return
  }
  func.func @transform_0(%arg0: i32) -> (i32, i32, i32, i32) {
    %c0_i32 = arith.constant 0 : i32
    %c0_i32_0 = arith.constant 0 : i32
    %c0_i32_1 = arith.constant 0 : i32
    %c0_i32_2 = arith.constant 0 : i32
    return %arg0, %c0_i32, %c0_i32_0, %c0_i32_1 : i32, i32, i32, i32
  }
  func.func @transform_1(%arg0: i32) -> (i32, i32, i32, i32) {
    %c0_i32 = arith.constant 0 : i32
    %c0_i32_0 = arith.constant 0 : i32
    %c0_i32_1 = arith.constant 0 : i32
    %c0_i32_2 = arith.constant 0 : i32
    return %arg0, %c0_i32, %c0_i32_0, %c0_i32_1 : i32, i32, i32, i32
  }
  func.func @transform_2(%arg0: i32) -> (i32, i32, i32, i32) {
    %c0_i32 = arith.constant 0 : i32
    %c0_i32_0 = arith.constant 0 : i32
    %c0_i32_1 = arith.constant 0 : i32
    %c0_i32_2 = arith.constant 0 : i32
    return %arg0, %c0_i32, %c0_i32_0, %c0_i32_1 : i32, i32, i32, i32
  }
  func.func @transform_3(%arg0: i32) -> (i32, i32, i32, i32) {
    %c0_i32 = arith.constant 0 : i32
    %c0_i32_0 = arith.constant 0 : i32
    %c0_i32_1 = arith.constant 0 : i32
    %c0_i32_2 = arith.constant 0 : i32
    return %arg0, %c0_i32, %c0_i32_0, %c0_i32_1 : i32, i32, i32, i32
  }
}

</mosaic_0001>

<bundles_post_ra>
// kernel: tpu_custom_call.1
= control target key start
LH: loop header
LB: loop body
LE: loop exit
PB: predicated region body
PF: predicated region fallthrough
CT: control target
= control target key end

     0   :  { %8 = vsyncpa [#allocation3], 0  ;;  %s1177_s0 = inlined_call_operand.hbm [shape: f32[2,3,64,64], index: 0, kind: input, shape index: {}]   ;;  %s1178_s1 = inlined_call_operand.hbm [shape: f32[2,3,64,64], index: 1, kind: input, shape index: {}]   ;;  %s1179_s2 = inlined_call_operand.hbm [shape: f32[2,3,64,64], index: 2, kind: input, shape index: {}]   ;;  %s1180_s3 = inlined_call_operand.vmem [shape: f32[2,9,63,63], index: 3, kind: output, shape index: {}]  }
   0x1   :  { %9 = vsyncpa [#allocation5], 0  ;;  %s524_s12 = smov [#allocation4]   ;;  %s525_s14 = smov [#allocation2]  }
   0x2   :  { %s27_s13 = sshll.u32 %s524_s12, 4  ;;  %s15_s15 = sshll.u32 %s525_s14, 4  ;;  %s28_s13 = int_to_ptr.vmem [resolvable:$true] %s27_s13  ;;  %s549_s15 = int_to_ptr.vmem [resolvable:$true] %s15_s15 }
   0x3   :  { %s454_s18 = scalar_lea.hbm %s1178_s1, 6144 }
   0x4   :  { %p455_p0 = scmp.ne.s32.totalorder %s1178_s1, %s454_s18  ;;  %p458_p1 = scmp.lt.u32.totalorder %s454_s18, %s1178_s1 }
   0x6   :  { %p460_p2 = pnand %p458_p1, %p455_p0 }
   0x8   :  { %463 = shalt.err (!%p460_p2)
}
   0x9   :  { %s464_s23 = scalar_lea.vmem %s28_s13, 6144  ;;  %p469_p4 = scmp.lt.s32.totalorder %s28_s13, %s28_s13 }
   0xa   :  { %p465_p3 = scmp.ne.s32.totalorder %s28_s13, %s464_s23  ;;  %p470_p5 = scmp.lt.s32.totalorder %s464_s23, %s464_s23 }
   0xc   :  { %p471_p6 = por %p470_p5, %p469_p4 }
   0xe   :  { %p472_p7 = pnand %p471_p6, %p465_p3 }
  0x10   :  { %475 = shalt.err (!%p472_p7)
}
  0x11   :  { %s526_s24 = smov 128   ;;  %s527_s25 = smov 8  }
  0x12   :  { %33 = dma.hbm_to_vmem [thread:$0]  %s1178_s1, 6144, %s28_s13, [#allocation5], %s526_s24, %s526_s24, %s527_s25  }
  0x13   :  { %s476_s30 = scalar_lea.hbm %s1177_s0, 6144 }
  0x14   :  { %p477_p8 = scmp.ne.s32.totalorder %s1177_s0, %s476_s30  ;;  %p480_p9 = scmp.lt.u32.totalorder %s476_s30, %s1177_s0 }
  0x16   :  { %p482_p10 = pnand %p480_p9, %p477_p8 }
  0x18   :  { %485 = shalt.err (!%p482_p10)
}
  0x19   :  { %s486_s8 = scalar_lea.vmem %s549_s15, 6144  ;;  %p491_p12 = scmp.lt.s32.totalorder %s549_s15, %s549_s15 }
  0x1a   :  { %p487_p11 = scmp.ne.s32.totalorder %s549_s15, %s486_s8  ;;  %p492_p13 = scmp.lt.s32.totalorder %s486_s8, %s486_s8 }
  0x1c   :  { %p493_p0 = por %p492_p13, %p491_p12 }
  0x1e   :  { %p494_p1 = pnand %p493_p0, %p487_p11 }
  0x20   :  { %497 = shalt.err (!%p494_p1)
}
  0x21   :  { %21 = dma.hbm_to_vmem [thread:$0]  %s1177_s0, 6144, %s549_s15, [#allocation3], %s526_s24, %s526_s24, %s527_s25  }
  0x22   :  { %s528_s10 = smov [#allocation6]   ;;  %s498_s14 = scalar_lea.hbm %s1179_s2, 6144 }
  0x23   :  { %s39_s11 = sshll.u32 %s528_s10, 4  ;;  %p499_p2 = scmp.ne.s32.totalorder %s1179_s2, %s498_s14  ;;  %s40_s11 = int_to_ptr.vmem [resolvable:$true] %s39_s11 }
  0x24   :  { %p502_p3 = scmp.lt.u32.totalorder %s498_s14, %s1179_s2 }
  0x26   :  { %p504_p4 = pnand %p502_p3, %p499_p2 }
  0x28   :  { %507 = shalt.err (!%p504_p4)
}
  0x29   :  { %s508_s20 = scalar_lea.vmem %s40_s11, 6144  ;;  %p513_p6 = scmp.lt.s32.totalorder %s40_s11, %s40_s11 }
  0x2a   :  { %p509_p5 = scmp.ne.s32.totalorder %s40_s11, %s508_s20  ;;  %p514_p7 = scmp.lt.s32.totalorder %s508_s20, %s508_s20 }
  0x2c   :  { %p515_p8 = por %p514_p7, %p513_p6 }
  0x2e   :  { %p516_p9 = pnand %p515_p8, %p509_p5 }
  0x30   :  { %519 = shalt.err (!%p516_p9)
}
  0x31   :  { %45 = dma.hbm_to_vmem [thread:$0]  %s1179_s2, 6144, %s40_s11, [#allocation5], %s526_s24, %s526_s24, %s527_s25  }
  0x32   :  { %520 = dma.done.wait [#allocation3], 6144  }
  0x33   :  { %521 = vsyncadd [#allocation3], 4294961152 }
  0x34   :  { %522 = dma.done.wait [#allocation5], 12288  }
  0x35   :  { %523 = vsyncadd [#allocation5], 4294955008  ;;  %vm103_vm0 = vcmask 515072   ;;  %v55_v0 = vld [vmem:[#allocation2] sm:$0xff]  ;;  %v56_v1 = vld [vmem:[#allocation2 + $0x8] sm:$0xff]  ;;  %vm111_vm1 = vcmask 514048  }
  0x36   :  { %v57_v2 = vld [vmem:[#allocation2 + $0x10] sm:$0xff]  ;;  %104 = vst.msk [vmem:[%s1180_s3] sm:$0xff] %vm103_vm0, %v55_v0  ;;  %105 = vst.msk [vmem:[%s1180_s3 + $0x8] sm:$0xff] %vm103_vm0, %v56_v1  ;;  %v58_v3 = vld [vmem:[#allocation2 + $0x18] sm:$0xff] }
  0x37   :  { %106 = vst.msk [vmem:[%s1180_s3 + $0x10] sm:$0xff] %vm103_vm0, %v57_v2  ;;  %v59_v4 = vld [vmem:[#allocation2 + $0x20] sm:$0xff]  ;;  %v60_v5 = vld [vmem:[#allocation2 + $0x28] sm:$0xff]  ;;  %107 = vst.msk [vmem:[%s1180_s3 + $0x18] sm:$0xff] %vm103_vm0, %v58_v3 }
  0x38   :  { %108 = vst.msk [vmem:[%s1180_s3 + $0x20] sm:$0xff] %vm103_vm0, %v59_v4  ;;  %109 = vst.msk [vmem:[%s1180_s3 + $0x28] sm:$0xff] %vm103_vm0, %v60_v5  ;;  %v61_v6 = vld [vmem:[#allocation2 + $0x30] sm:$0xff]  ;;  %v62_v7 = vld [vmem:[#allocation2 + $0x38] sm:$0x7f] }
  0x39   :  { %v63_v8 = vld [vmem:[#allocation2 + $0x40] sm:$0xff]  ;;  %110 = vst.msk [vmem:[%s1180_s3 + $0x30] sm:$0xff] %vm103_vm0, %v61_v6  ;;  %v64_v9 = vld [vmem:[#allocation2 + $0x48] sm:$0xff]  ;;  %v65_v10 = vld [vmem:[#allocation2 + $0x50] sm:$0xff] }
  0x3a   :  { %112 = vst.msk [vmem:[%s1180_s3 + $0x38] sm:$0x7f] %vm111_vm1, %v62_v7  ;;  %v66_v11 = vld [vmem:[#allocation2 + $0x58] sm:$0xff]  ;;  %v67_v12 = vld [vmem:[#allocation2 + $0x60] sm:$0xff]  ;;  %v68_v13 = vld [vmem:[#allocation2 + $0x68] sm:$0xff] }
  0x3b   :  { %113 = vst.msk [vmem:[%s1180_s3 + $0x40] sm:$0xff] %vm103_vm0, %v63_v8  ;;  %114 = vst.msk [vmem:[%s1180_s3 + $0x48] sm:$0xff] %vm103_vm0, %v64_v9  ;;  %v69_v14 = vld [vmem:[#allocation2 + $0x70] sm:$0xff]  ;;  %v70_v15 = vld [vmem:[#allocation2 + $0x78] sm:$0x7f] }
  0x3c   :  { %115 = vst.msk [vmem:[%s1180_s3 + $0x50] sm:$0xff] %vm103_vm0, %v65_v10  ;;  %116 = vst.msk [vmem:[%s1180_s3 + $0x58] sm:$0xff] %vm103_vm0, %v66_v11  ;;  %v71_v16 = vld [vmem:[#allocation2 + $0x80] sm:$0xff]  ;;  %v72_v17 = vld [vmem:[#allocation2 + $0x88] sm:$0xff] }
  0x3d   :  { %117 = vst.msk [vmem:[%s1180_s3 + $0x60] sm:$0xff] %vm103_vm0, %v67_v12  ;;  %118 = vst.msk [vmem:[%s1180_s3 + $0x68] sm:$0xff] %vm103_vm0, %v68_v13  ;;  %v73_v18 = vld [vmem:[#allocation2 + $0x90] sm:$0xff]  ;;  %v74_v19 = vld [vmem:[#allocation2 + $0x98] sm:$0xff] }
  0x3e   :  { %119 = vst.msk [vmem:[%s1180_s3 + $0x70] sm:$0xff] %vm103_vm0, %v69_v14  ;;  %121 = vst.msk [vmem:[%s1180_s3 + $0x80] sm:$0xff] %vm103_vm0, %v71_v16  ;;  %v75_v20 = vld [vmem:[#allocation2 + $0xa0] sm:$0xff]  ;;  %v76_v21 = vld [vmem:[#allocation2 + $0xa8] sm:$0xff] }
  0x3f   :  { %120 = vst.msk [vmem:[%s1180_s3 + $0x78] sm:$0x7f] %vm111_vm1, %v70_v15  ;;  %v77_v22 = vld [vmem:[#allocation2 + $0xb0] sm:$0xff]  ;;  %v78_v23 = vld [vmem:[#allocation2 + $0xb8] sm:$0x7f]  ;;  %v79_v24 = vld [vmem:[#allocation2 + $0xc0] sm:$0xff] }
  0x40   :  { %122 = vst.msk [vmem:[%s1180_s3 + $0x88] sm:$0xff] %vm103_vm0, %v72_v17  ;;  %123 = vst.msk [vmem:[%s1180_s3 + $0x90] sm:$0xff] %vm103_vm0, %v73_v18  ;;  %v80_v25 = vld [vmem:[#allocation2 + $0xc8] sm:$0xff]  ;;  %v81_v26 = vld [vmem:[#allocation2 + $0xd0] sm:$0xff] }
  0x41   :  { %124 = vst.msk [vmem:[%s1180_s3 + $0x98] sm:$0xff] %vm103_vm0, %v74_v19  ;;  %125 = vst.msk [vmem:[%s1180_s3 + $0xa0] sm:$0xff] %vm103_vm0, %v75_v20  ;;  %v82_v27 = vld [vmem:[#allocation2 + $0xd8] sm:$0xff]  ;;  %v83_v28 = vld [vmem:[#allocation2 + $0xe0] sm:$0xff] }
  0x42   :  { %126 = vst.msk [vmem:[%s1180_s3 + $0xa8] sm:$0xff] %vm103_vm0, %v76_v21  ;;  %127 = vst.msk [vmem:[%s1180_s3 + $0xb0] sm:$0xff] %vm103_vm0, %v77_v22  ;;  %v84_v29 = vld [vmem:[#allocation2 + $0xe8] sm:$0xff]  ;;  %v85_v30 = vld [vmem:[#allocation2 + $0xf0] sm:$0xff] }
  0x43   :  { %128 = vst.msk [vmem:[%s1180_s3 + $0xb8] sm:$0x7f] %vm111_vm1, %v78_v23  ;;  %v86_v31 = vld [vmem:[#allocation2 + $0xf8] sm:$0x7f]  ;;  %v87_v32 = vld [vmem:[#allocation2 + $0x100] sm:$0xff]  ;;  %v88_v33 = vld [vmem:[#allocation2 + $0x108] sm:$0xff] }
  0x44   :  { %129 = vst.msk [vmem:[%s1180_s3 + $0x240] sm:$0xff] %vm103_vm0, %v79_v24  ;;  %130 = vst.msk [vmem:[%s1180_s3 + $0x248] sm:$0xff] %vm103_vm0, %v80_v25  ;;  %v89_v34 = vld [vmem:[#allocation2 + $0x110] sm:$0xff]  ;;  %v90_v35 = vld [vmem:[#allocation2 + $0x118] sm:$0xff] }
  0x45   :  { %131 = vst.msk [vmem:[%s1180_s3 + $0x250] sm:$0xff] %vm103_vm0, %v81_v26  ;;  %132 = vst.msk [vmem:[%s1180_s3 + $0x258] sm:$0xff] %vm103_vm0, %v82_v27  ;;  %v91_v36 = vld [vmem:[#allocation2 + $0x120] sm:$0xff]  ;;  %v92_v37 = vld [vmem:[#allocation2 + $0x128] sm:$0xff] }
  0x46   :  { %133 = vst.msk [vmem:[%s1180_s3 + $0x260] sm:$0xff] %vm103_vm0, %v83_v28  ;;  %134 = vst.msk [vmem:[%s1180_s3 + $0x268] sm:$0xff] %vm103_vm0, %v84_v29  ;;  %v93_v38 = vld [vmem:[#allocation2 + $0x130] sm:$0xff]  ;;  %v94_v39 = vld [vmem:[#allocation2 + $0x138] sm:$0x7f] }
  0x47   :  { %135 = vst.msk [vmem:[%s1180_s3 + $0x270] sm:$0xff] %vm103_vm0, %v85_v30  ;;  %137 = vst.msk [vmem:[%s1180_s3 + $0x280] sm:$0xff] %vm103_vm0, %v87_v32  ;;  %v95_v40 = vld [vmem:[#allocation2 + $0x140] sm:$0xff]  ;;  %v96_v41 = vld [vmem:[#allocation2 + $0x148] sm:$0xff] }
  0x48   :  { %136 = vst.msk [vmem:[%s1180_s3 + $0x278] sm:$0x7f] %vm111_vm1, %v86_v31  ;;  %144 = vst.msk [vmem:[%s1180_s3 + $0x2b8] sm:$0x7f] %vm111_vm1, %v94_v39  ;;  %v97_v42 = vld [vmem:[#allocation2 + $0x150] sm:$0xff]  ;;  %v98_v43 = vld [vmem:[#allocation2 + $0x158] sm:$0xff] }
  0x49   :  { %138 = vst.msk [vmem:[%s1180_s3 + $0x288] sm:$0xff] %vm103_vm0, %v88_v33  ;;  %139 = vst.msk [vmem:[%s1180_s3 + $0x290] sm:$0xff] %vm103_vm0, %v89_v34  ;;  %v99_v44 = vld [vmem:[#allocation2 + $0x160] sm:$0xff]  ;;  %v100_v45 = vld [vmem:[#allocation2 + $0x168] sm:$0xff] }
  0x4a   :  { %140 = vst.msk [vmem:[%s1180_s3 + $0x298] sm:$0xff] %vm103_vm0, %v90_v35  ;;  %141 = vst.msk [vmem:[%s1180_s3 + $0x2a0] sm:$0xff] %vm103_vm0, %v91_v36  ;;  %v101_v46 = vld [vmem:[#allocation2 + $0x170] sm:$0xff]  ;;  %v102_v47 = vld [vmem:[#allocation2 + $0x178] sm:$0x7f] }
  0x4b   :  { %142 = vst.msk [vmem:[%s1180_s3 + $0x2a8] sm:$0xff] %vm103_vm0, %v92_v37  ;;  %143 = vst.msk [vmem:[%s1180_s3 + $0x2b0] sm:$0xff] %vm103_vm0, %v93_v38  ;;  %v153_v48 = vld [vmem:[#allocation4] sm:$0xff]  ;;  %v154_v49 = vld [vmem:[#allocation4 + $0x8] sm:$0xff] }
  0x4c   :  { %145 = vst.msk [vmem:[%s1180_s3 + $0x2c0] sm:$0xff] %vm103_vm0, %v95_v40  ;;  %146 = vst.msk [vmem:[%s1180_s3 + $0x2c8] sm:$0xff] %vm103_vm0, %v96_v41  ;;  %v155_v50 = vld [vmem:[#allocation4 + $0x10] sm:$0xff]  ;;  %v156_v51 = vld [vmem:[#allocation4 + $0x18] sm:$0xff] }
  0x4d   :  { %147 = vst.msk [vmem:[%s1180_s3 + $0x2d0] sm:$0xff] %vm103_vm0, %v97_v42  ;;  %148 = vst.msk [vmem:[%s1180_s3 + $0x2d8] sm:$0xff] %vm103_vm0, %v98_v43  ;;  %v157_v52 = vld [vmem:[#allocation4 + $0x20] sm:$0xff]  ;;  %v158_v53 = vld [vmem:[#allocation4 + $0x28] sm:$0xff] }
  0x4e   :  { %149 = vst.msk [vmem:[%s1180_s3 + $0x2e0] sm:$0xff] %vm103_vm0, %v99_v44  ;;  %150 = vst.msk [vmem:[%s1180_s3 + $0x2e8] sm:$0xff] %vm103_vm0, %v100_v45  ;;  %v159_v54 = vld [vmem:[#allocation4 + $0x30] sm:$0xff]  ;;  %v160_v55 = vld [vmem:[#allocation4 + $0x38] sm:$0x7f] }
  0x4f   :  { %151 = vst.msk [vmem:[%s1180_s3 + $0x2f0] sm:$0xff] %vm103_vm0, %v101_v46  ;;  %353 = vst.msk [vmem:[%s1180_s3 + $0xc0] sm:$0xff] %vm103_vm0, %v153_v48  ;;  %v161_v56 = vld [vmem:[#allocation4 + $0x40] sm:$0xff]  ;;  %v162_v57 = vld [vmem:[#allocation4 + $0x48] sm:$0xff] }
  0x50   :  { %152 = vst.msk [vmem:[%s1180_s3 + $0x2f8] sm:$0x7f] %vm111_vm1, %v102_v47  ;;  %360 = vst.msk [vmem:[%s1180_s3 + $0xf8] sm:$0x7f] %vm111_vm1, %v160_v55  ;;  %v163_v58 = vld [vmem:[#allocation4 + $0x50] sm:$0xff]  ;;  %v164_v59 = vld [vmem:[#allocation4 + $0x58] sm:$0xff] }
  0x51   :  { %354 = vst.msk [vmem:[%s1180_s3 + $0xc8] sm:$0xff] %vm103_vm0, %v154_v49  ;;  %355 = vst.msk [vmem:[%s1180_s3 + $0xd0] sm:$0xff] %vm103_vm0, %v155_v50  ;;  %v165_v60 = vld [vmem:[#allocation4 + $0x60] sm:$0xff]  ;;  %v166_v61 = vld [vmem:[#allocation4 + $0x68] sm:$0xff] }
  0x52   :  { %356 = vst.msk [vmem:[%s1180_s3 + $0xd8] sm:$0xff] %vm103_vm0, %v156_v51  ;;  %357 = vst.msk [vmem:[%s1180_s3 + $0xe0] sm:$0xff] %vm103_vm0, %v157_v52  ;;  %v167_v62 = vld [vmem:[#allocation4 + $0x70] sm:$0xff]  ;;  %v168_v63 = vld [vmem:[#allocation4 + $0x78] sm:$0x7f] }
  0x53   :  { %358 = vst.msk [vmem:[%s1180_s3 + $0xe8] sm:$0xff] %vm103_vm0, %v158_v53  ;;  %359 = vst.msk [vmem:[%s1180_s3 + $0xf0] sm:$0xff] %vm103_vm0, %v159_v54  ;;  %v169_v0 = vld [vmem:[#allocation4 + $0x80] sm:$0xff]  ;;  %v170_v1 = vld [vmem:[#allocation4 + $0x88] sm:$0xff] }
  0x54   :  { %361 = vst.msk [vmem:[%s1180_s3 + $0x100] sm:$0xff] %vm103_vm0, %v161_v56  ;;  %362 = vst.msk [vmem:[%s1180_s3 + $0x108] sm:$0xff] %vm103_vm0, %v162_v57  ;;  %v171_v2 = vld [vmem:[#allocation4 + $0x90] sm:$0xff]  ;;  %v172_v3 = vld [vmem:[#allocation4 + $0x98] sm:$0xff] }
  0x55   :  { %363 = vst.msk [vmem:[%s1180_s3 + $0x110] sm:$0xff] %vm103_vm0, %v163_v58  ;;  %364 = vst.msk [vmem:[%s1180_s3 + $0x118] sm:$0xff] %vm103_vm0, %v164_v59  ;;  %v173_v4 = vld [vmem:[#allocation4 + $0xa0] sm:$0xff]  ;;  %v174_v5 = vld [vmem:[#allocation4 + $0xa8] sm:$0xff] }
  0x56   :  { %365 = vst.msk [vmem:[%s1180_s3 + $0x120] sm:$0xff] %vm103_vm0, %v165_v60  ;;  %366 = vst.msk [vmem:[%s1180_s3 + $0x128] sm:$0xff] %vm103_vm0, %v166_v61  ;;  %v175_v6 = vld [vmem:[#allocation4 + $0xb0] sm:$0xff]  ;;  %v176_v7 = vld [vmem:[#allocation4 + $0xb8] sm:$0x7f] }
  0x57   :  { %367 = vst.msk [vmem:[%s1180_s3 + $0x130] sm:$0xff] %vm103_vm0, %v167_v62  ;;  %369 = vst.msk [vmem:[%s1180_s3 + $0x140] sm:$0xff] %vm103_vm0, %v169_v0  ;;  %v177_v8 = vld [vmem:[#allocation4 + $0xc0] sm:$0xff]  ;;  %v178_v9 = vld [vmem:[#allocation4 + $0xc8] sm:$0xff] }
  0x58   :  { %368 = vst.msk [vmem:[%s1180_s3 + $0x138] sm:$0x7f] %vm111_vm1, %v168_v63  ;;  %376 = vst.msk [vmem:[%s1180_s3 + $0x178] sm:$0x7f] %vm111_vm1, %v176_v7  ;;  %v179_v10 = vld [vmem:[#allocation4 + $0xd0] sm:$0xff]  ;;  %v180_v11 = vld [vmem:[#allocation4 + $0xd8] sm:$0xff] }
  0x59   :  { %370 = vst.msk [vmem:[%s1180_s3 + $0x148] sm:$0xff] %vm103_vm0, %v170_v1  ;;  %371 = vst.msk [vmem:[%s1180_s3 + $0x150] sm:$0xff] %vm103_vm0, %v171_v2  ;;  %v181_v12 = vld [vmem:[#allocation4 + $0xe0] sm:$0xff]  ;;  %v182_v13 = vld [vmem:[#allocation4 + $0xe8] sm:$0xff] }
  0x5a   :  { %372 = vst.msk [vmem:[%s1180_s3 + $0x158] sm:$0xff] %vm103_vm0, %v172_v3  ;;  %373 = vst.msk [vmem:[%s1180_s3 + $0x160] sm:$0xff] %vm103_vm0, %v173_v4  ;;  %v183_v14 = vld [vmem:[#allocation4 + $0xf0] sm:$0xff]  ;;  %v184_v15 = vld [vmem:[#allocation4 + $0xf8] sm:$0x7f] }
  0x5b   :  { %374 = vst.msk [vmem:[%s1180_s3 + $0x168] sm:$0xff] %vm103_vm0, %v174_v5  ;;  %375 = vst.msk [vmem:[%s1180_s3 + $0x170] sm:$0xff] %vm103_vm0, %v175_v6  ;;  %v185_v16 = vld [vmem:[#allocation4 + $0x100] sm:$0xff]  ;;  %v186_v17 = vld [vmem:[#allocation4 + $0x108] sm:$0xff] }
  0x5c   :  { %377 = vst.msk [vmem:[%s1180_s3 + $0x300] sm:$0xff] %vm103_vm0, %v177_v8  ;;  %378 = vst.msk [vmem:[%s1180_s3 + $0x308] sm:$0xff] %vm103_vm0, %v178_v9  ;;  %v187_v18 = vld [vmem:[#allocation4 + $0x110] sm:$0xff]  ;;  %v188_v19 = vld [vmem:[#allocation4 + $0x118] sm:$0xff] }
  0x5d   :  { %379 = vst.msk [vmem:[%s1180_s3 + $0x310] sm:$0xff] %vm103_vm0, %v179_v10  ;;  %380 = vst.msk [vmem:[%s1180_s3 + $0x318] sm:$0xff] %vm103_vm0, %v180_v11  ;;  %v189_v20 = vld [vmem:[#allocation4 + $0x120] sm:$0xff]  ;;  %v190_v21 = vld [vmem:[#allocation4 + $0x128] sm:$0xff] }
  0x5e   :  { %381 = vst.msk [vmem:[%s1180_s3 + $0x320] sm:$0xff] %vm103_vm0, %v181_v12  ;;  %382 = vst.msk [vmem:[%s1180_s3 + $0x328] sm:$0xff] %vm103_vm0, %v182_v13  ;;  %v191_v22 = vld [vmem:[#allocation4 + $0x130] sm:$0xff]  ;;  %v192_v23 = vld [vmem:[#allocation4 + $0x138] sm:$0x7f] }
  0x5f   :  { %383 = vst.msk [vmem:[%s1180_s3 + $0x330] sm:$0xff] %vm103_vm0, %v183_v14  ;;  %385 = vst.msk [vmem:[%s1180_s3 + $0x340] sm:$0xff] %vm103_vm0, %v185_v16  ;;  %v193_v24 = vld [vmem:[#allocation4 + $0x140] sm:$0xff]  ;;  %v194_v25 = vld [vmem:[#allocation4 + $0x148] sm:$0xff] }
  0x60   :  { %384 = vst.msk [vmem:[%s1180_s3 + $0x338] sm:$0x7f] %vm111_vm1, %v184_v15  ;;  %392 = vst.msk [vmem:[%s1180_s3 + $0x378] sm:$0x7f] %vm111_vm1, %v192_v23  ;;  %v195_v26 = vld [vmem:[#allocation4 + $0x150] sm:$0xff]  ;;  %v196_v27 = vld [vmem:[#allocation4 + $0x158] sm:$0xff] }
  0x61   :  { %386 = vst.msk [vmem:[%s1180_s3 + $0x348] sm:$0xff] %vm103_vm0, %v186_v17  ;;  %387 = vst.msk [vmem:[%s1180_s3 + $0x350] sm:$0xff] %vm103_vm0, %v187_v18  ;;  %v197_v28 = vld [vmem:[#allocation4 + $0x160] sm:$0xff]  ;;  %v198_v29 = vld [vmem:[#allocation4 + $0x168] sm:$0xff] }
  0x62   :  { %388 = vst.msk [vmem:[%s1180_s3 + $0x358] sm:$0xff] %vm103_vm0, %v188_v19  ;;  %389 = vst.msk [vmem:[%s1180_s3 + $0x360] sm:$0xff] %vm103_vm0, %v189_v20  ;;  %v199_v30 = vld [vmem:[#allocation4 + $0x170] sm:$0xff]  ;;  %v200_v31 = vld [vmem:[#allocation4 + $0x178] sm:$0x7f] }
  0x63   :  { %390 = vst.msk [vmem:[%s1180_s3 + $0x368] sm:$0xff] %vm103_vm0, %v190_v21  ;;  %391 = vst.msk [vmem:[%s1180_s3 + $0x370] sm:$0xff] %vm103_vm0, %v191_v22  ;;  %v250_v32 = vld [vmem:[#allocation6] sm:$0xff]  ;;  %v251_v33 = vld [vmem:[#allocation6 + $0x8] sm:$0xff] }
  0x64   :  { %393 = vst.msk [vmem:[%s1180_s3 + $0x380] sm:$0xff] %vm103_vm0, %v193_v24  ;;  %394 = vst.msk [vmem:[%s1180_s3 + $0x388] sm:$0xff] %vm103_vm0, %v194_v25  ;;  %v252_v34 = vld [vmem:[#allocation6 + $0x10] sm:$0xff]  ;;  %v253_v35 = vld [vmem:[#allocation6 + $0x18] sm:$0xff] }
  0x65   :  { %395 = vst.msk [vmem:[%s1180_s3 + $0x390] sm:$0xff] %vm103_vm0, %v195_v26  ;;  %396 = vst.msk [vmem:[%s1180_s3 + $0x398] sm:$0xff] %vm103_vm0, %v196_v27  ;;  %v254_v36 = vld [vmem:[#allocation6 + $0x20] sm:$0xff]  ;;  %v255_v37 = vld [vmem:[#allocation6 + $0x28] sm:$0xff] }
  0x66   :  { %397 = vst.msk [vmem:[%s1180_s3 + $0x3a0] sm:$0xff] %vm103_vm0, %v197_v28  ;;  %398 = vst.msk [vmem:[%s1180_s3 + $0x3a8] sm:$0xff] %vm103_vm0, %v198_v29  ;;  %v256_v38 = vld [vmem:[#allocation6 + $0x30] sm:$0xff]  ;;  %v257_v39 = vld [vmem:[#allocation6 + $0x38] sm:$0x7f] }
  0x67   :  { %399 = vst.msk [vmem:[%s1180_s3 + $0x3b0] sm:$0xff] %vm103_vm0, %v199_v30  ;;  %401 = vst.msk [vmem:[%s1180_s3 + $0x180] sm:$0xff] %vm103_vm0, %v250_v32  ;;  %v258_v40 = vld [vmem:[#allocation6 + $0x40] sm:$0xff]  ;;  %v259_v41 = vld [vmem:[#allocation6 + $0x48] sm:$0xff] }
  0x68   :  { %400 = vst.msk [vmem:[%s1180_s3 + $0x3b8] sm:$0x7f] %vm111_vm1, %v200_v31  ;;  %408 = vst.msk [vmem:[%s1180_s3 + $0x1b8] sm:$0x7f] %vm111_vm1, %v257_v39  ;;  %v260_v42 = vld [vmem:[#allocation6 + $0x50] sm:$0xff]  ;;  %v261_v43 = vld [vmem:[#allocation6 + $0x58] sm:$0xff] }
  0x69   :  { %402 = vst.msk [vmem:[%s1180_s3 + $0x188] sm:$0xff] %vm103_vm0, %v251_v33  ;;  %403 = vst.msk [vmem:[%s1180_s3 + $0x190] sm:$0xff] %vm103_vm0, %v252_v34  ;;  %v262_v44 = vld [vmem:[#allocation6 + $0x60] sm:$0xff]  ;;  %v263_v45 = vld [vmem:[#allocation6 + $0x68] sm:$0xff] }
  0x6a   :  { %404 = vst.msk [vmem:[%s1180_s3 + $0x198] sm:$0xff] %vm103_vm0, %v253_v35  ;;  %405 = vst.msk [vmem:[%s1180_s3 + $0x1a0] sm:$0xff] %vm103_vm0, %v254_v36  ;;  %v264_v46 = vld [vmem:[#allocation6 + $0x70] sm:$0xff]  ;;  %v265_v47 = vld [vmem:[#allocation6 + $0x78] sm:$0x7f] }
  0x6b   :  { %406 = vst.msk [vmem:[%s1180_s3 + $0x1a8] sm:$0xff] %vm103_vm0, %v255_v37  ;;  %407 = vst.msk [vmem:[%s1180_s3 + $0x1b0] sm:$0xff] %vm103_vm0, %v256_v38  ;;  %v266_v48 = vld [vmem:[#allocation6 + $0x80] sm:$0xff]  ;;  %v267_v49 = vld [vmem:[#allocation6 + $0x88] sm:$0xff] }
  0x6c   :  { %409 = vst.msk [vmem:[%s1180_s3 + $0x1c0] sm:$0xff] %vm103_vm0, %v258_v40  ;;  %410 = vst.msk [vmem:[%s1180_s3 + $0x1c8] sm:$0xff] %vm103_vm0, %v259_v41  ;;  %v268_v50 = vld [vmem:[#allocation6 + $0x90] sm:$0xff]  ;;  %v269_v51 = vld [vmem:[#allocation6 + $0x98] sm:$0xff] }
  0x6d   :  { %411 = vst.msk [vmem:[%s1180_s3 + $0x1d0] sm:$0xff] %vm103_vm0, %v260_v42  ;;  %412 = vst.msk [vmem:[%s1180_s3 + $0x1d8] sm:$0xff] %vm103_vm0, %v261_v43  ;;  %v270_v52 = vld [vmem:[#allocation6 + $0xa0] sm:$0xff]  ;;  %v271_v53 = vld [vmem:[#allocation6 + $0xa8] sm:$0xff] }
  0x6e   :  { %413 = vst.msk [vmem:[%s1180_s3 + $0x1e0] sm:$0xff] %vm103_vm0, %v262_v44  ;;  %414 = vst.msk [vmem:[%s1180_s3 + $0x1e8] sm:$0xff] %vm103_vm0, %v263_v45  ;;  %v272_v54 = vld [vmem:[#allocation6 + $0xb0] sm:$0xff]  ;;  %v273_v55 = vld [vmem:[#allocation6 + $0xb8] sm:$0x7f] }
  0x6f   :  { %415 = vst.msk [vmem:[%s1180_s3 + $0x1f0] sm:$0xff] %vm103_vm0, %v264_v46  ;;  %417 = vst.msk [vmem:[%s1180_s3 + $0x200] sm:$0xff] %vm103_vm0, %v266_v48  ;;  %v274_v56 = vld [vmem:[#allocation6 + $0xc0] sm:$0xff]  ;;  %v275_v57 = vld [vmem:[#allocation6 + $0xc8] sm:$0xff] }
  0x70   :  { %416 = vst.msk [vmem:[%s1180_s3 + $0x1f8] sm:$0x7f] %vm111_vm1, %v265_v47  ;;  %424 = vst.msk [vmem:[%s1180_s3 + $0x238] sm:$0x7f] %vm111_vm1, %v273_v55  ;;  %v276_v58 = vld [vmem:[#allocation6 + $0xd0] sm:$0xff]  ;;  %v277_v59 = vld [vmem:[#allocation6 + $0xd8] sm:$0xff] }
  0x71   :  { %418 = vst.msk [vmem:[%s1180_s3 + $0x208] sm:$0xff] %vm103_vm0, %v267_v49  ;;  %419 = vst.msk [vmem:[%s1180_s3 + $0x210] sm:$0xff] %vm103_vm0, %v268_v50  ;;  %v278_v60 = vld [vmem:[#allocation6 + $0xe0] sm:$0xff]  ;;  %v279_v61 = vld [vmem:[#allocation6 + $0xe8] sm:$0xff] }
  0x72   :  { %420 = vst.msk [vmem:[%s1180_s3 + $0x218] sm:$0xff] %vm103_vm0, %v269_v51  ;;  %421 = vst.msk [vmem:[%s1180_s3 + $0x220] sm:$0xff] %vm103_vm0, %v270_v52  ;;  %v280_v62 = vld [vmem:[#allocation6 + $0xf0] sm:$0xff]  ;;  %v281_v63 = vld [vmem:[#allocation6 + $0xf8] sm:$0x7f] }
  0x73   :  { %422 = vst.msk [vmem:[%s1180_s3 + $0x228] sm:$0xff] %vm103_vm0, %v271_v53  ;;  %423 = vst.msk [vmem:[%s1180_s3 + $0x230] sm:$0xff] %vm103_vm0, %v272_v54  ;;  %v282_v0 = vld [vmem:[#allocation6 + $0x100] sm:$0xff]  ;;  %v283_v1 = vld [vmem:[#allocation6 + $0x108] sm:$0xff] }
  0x74   :  { %425 = vst.msk [vmem:[%s1180_s3 + $0x3c0] sm:$0xff] %vm103_vm0, %v274_v56  ;;  %426 = vst.msk [vmem:[%s1180_s3 + $0x3c8] sm:$0xff] %vm103_vm0, %v275_v57  ;;  %v284_v2 = vld [vmem:[#allocation6 + $0x110] sm:$0xff]  ;;  %v285_v3 = vld [vmem:[#allocation6 + $0x118] sm:$0xff] }
  0x75   :  { %427 = vst.msk [vmem:[%s1180_s3 + $0x3d0] sm:$0xff] %vm103_vm0, %v276_v58  ;;  %428 = vst.msk [vmem:[%s1180_s3 + $0x3d8] sm:$0xff] %vm103_vm0, %v277_v59  ;;  %v286_v4 = vld [vmem:[#allocation6 + $0x120] sm:$0xff]  ;;  %v287_v5 = vld [vmem:[#allocation6 + $0x128] sm:$0xff] }
  0x76   :  { %429 = vst.msk [vmem:[%s1180_s3 + $0x3e0] sm:$0xff] %vm103_vm0, %v278_v60  ;;  %430 = vst.msk [vmem:[%s1180_s3 + $0x3e8] sm:$0xff] %vm103_vm0, %v279_v61  ;;  %v288_v6 = vld [vmem:[#allocation6 + $0x130] sm:$0xff]  ;;  %v289_v7 = vld [vmem:[#allocation6 + $0x138] sm:$0x7f] }
  0x77   :  { %431 = vst.msk [vmem:[%s1180_s3 + $0x3f0] sm:$0xff] %vm103_vm0, %v280_v62  ;;  %433 = vst.msk [vmem:[%s1180_s3 + $0x400] sm:$0xff] %vm103_vm0, %v282_v0  ;;  %v290_v8 = vld [vmem:[#allocation6 + $0x140] sm:$0xff]  ;;  %v291_v9 = vld [vmem:[#allocation6 + $0x148] sm:$0xff] }
  0x78   :  { %432 = vst.msk [vmem:[%s1180_s3 + $0x3f8] sm:$0x7f] %vm111_vm1, %v281_v63  ;;  %440 = vst.msk [vmem:[%s1180_s3 + $0x438] sm:$0x7f] %vm111_vm1, %v289_v7  ;;  %v292_v10 = vld [vmem:[#allocation6 + $0x150] sm:$0xff]  ;;  %v293_v11 = vld [vmem:[#allocation6 + $0x158] sm:$0xff] }
  0x79   :  { %434 = vst.msk [vmem:[%s1180_s3 + $0x408] sm:$0xff] %vm103_vm0, %v283_v1  ;;  %435 = vst.msk [vmem:[%s1180_s3 + $0x410] sm:$0xff] %vm103_vm0, %v284_v2  ;;  %v294_v12 = vld [vmem:[#allocation6 + $0x160] sm:$0xff]  ;;  %v295_v13 = vld [vmem:[#allocation6 + $0x168] sm:$0xff] }
  0x7a   :  { %436 = vst.msk [vmem:[%s1180_s3 + $0x418] sm:$0xff] %vm103_vm0, %v285_v3  ;;  %437 = vst.msk [vmem:[%s1180_s3 + $0x420] sm:$0xff] %vm103_vm0, %v286_v4  ;;  %v296_v14 = vld [vmem:[#allocation6 + $0x170] sm:$0xff]  ;;  %v297_v15 = vld [vmem:[#allocation6 + $0x178] sm:$0x7f] }
  0x7b   :  { %438 = vst.msk [vmem:[%s1180_s3 + $0x428] sm:$0xff] %vm103_vm0, %v287_v5  ;;  %439 = vst.msk [vmem:[%s1180_s3 + $0x430] sm:$0xff] %vm103_vm0, %v288_v6 }
  0x7c   :  { %441 = vst.msk [vmem:[%s1180_s3 + $0x440] sm:$0xff] %vm103_vm0, %v290_v8  ;;  %442 = vst.msk [vmem:[%s1180_s3 + $0x448] sm:$0xff] %vm103_vm0, %v291_v9 }
  0x7d   :  { %443 = vst.msk [vmem:[%s1180_s3 + $0x450] sm:$0xff] %vm103_vm0, %v292_v10  ;;  %444 = vst.msk [vmem:[%s1180_s3 + $0x458] sm:$0xff] %vm103_vm0, %v293_v11 }
  0x7e   :  { %445 = vst.msk [vmem:[%s1180_s3 + $0x460] sm:$0xff] %vm103_vm0, %v294_v12  ;;  %446 = vst.msk [vmem:[%s1180_s3 + $0x468] sm:$0xff] %vm103_vm0, %v295_v13 }
  0x7f   :  { %447 = vst.msk [vmem:[%s1180_s3 + $0x470] sm:$0xff] %vm103_vm0, %v296_v14 }
  0x80   :  { %448 = vst.msk [vmem:[%s1180_s3 + $0x478] sm:$0x7f] %vm111_vm1, %v297_v15 }
  0x81   :  { %351 = vsyncpa [#allocation3], 1 }
  0x82   :  { %352 = vsyncpa [#allocation5], 1 }

</bundles_post_ra>
